<compile_context>
chip_gen: v6e
topology: v6e:2x2x1
jax: 0.10.0
libtpu: 0.0.40
codegen_flags: <defaults>
</compile_context>

<pallas_src>
import math

import jax
import jax.numpy as jnp
from jax.experimental import pallas as pl
from jax.experimental.pallas import tpu as pltpu


def _round_up(n, m):
    return ((n + m - 1) // m) * m


def _noise_embedding_kernel(x_ref, f_ref, ph_ref, w1_ref, b1_ref, w2_ref, b2_ref, o_ref):
    # x_ref : (TBP, K)            K = round_up(P, 8); cols >= P are zero padding
    # f_ref : (K, P*C_in)         F[j, j*C_in + k] = 2*pi*b_ext[k]  (zero rows >= P)
    # ph_ref: (1, P*C_in)         [0]*C_half + [pi/2]*C_half tiled P times (cos fold)
    # w1_ref: (P*C_in, P*C_out)   block-diagonal w1.T
    # b1_ref: (1, P*C_out)
    # w2_ref: (P*C_out, P*C_out)  block-diagonal w2.T
    # b2_ref: (1, P*C_out)
    # o_ref : (TBP, P*C_out)      lane-dense packed output

    # Gaussian Fourier projection: batch expansion + 2*pi*b multiply fused into one
    # tiny matmul; cos folded into sin via the +pi/2 phase.
    t = jnp.dot(x_ref[...], f_ref[...], preferred_element_type=jnp.float32) + ph_ref[...]
    feats = jnp.sin(t)                                          # (TBP, P*C_in)

    # linear_1 (block-diagonal over the P packed batch elements) + SiLU (tanh form).
    h = jnp.dot(feats, w1_ref[...], preferred_element_type=jnp.float32) + b1_ref[...]
    h = 0.5 * h * (1.0 + jnp.tanh(0.5 * h))

    # linear_2 + SiLU.
    h = jnp.dot(h, w2_ref[...], preferred_element_type=jnp.float32) + b2_ref[...]
    h = 0.5 * h * (1.0 + jnp.tanh(0.5 * h))

    o_ref[...] = h.astype(o_ref.dtype)                          # unmasked lane-dense store


def prepare_params(fourier_b, w1, b1, w2, b2, *, pack=None):
    """One-time parameter prep (do at init, not per call).

    Inputs follow PyTorch convention: fourier_b (C_in//2,), w*: (out, in), b*: (out,).
    Builds packed / block-diagonal kernel parameters (see kernel docstring).
    """
    f32 = jnp.float32
    c_half = fourier_b.shape[0]
    c_in = 2 * c_half
    c_out = w1.shape[0]
    if pack is None:
        pack = 128 // c_out if (c_out <= 128 and 128 % c_out == 0) else 1
    P = int(pack)
    k_dim = _round_up(P, 8)  # pad the tiny contraction dim up to one sublane group

    b_ext = jnp.concatenate([fourier_b, fourier_b]).astype(f32) * (2.0 * math.pi)    # (C_in,)
    phase_g = jnp.concatenate([jnp.zeros((c_half,), f32),
                               jnp.full((c_half,), 0.5 * math.pi, f32)])              # (C_in,)

    eye_p = jnp.eye(P, dtype=f32)
    f_mat = jnp.kron(eye_p, b_ext.reshape(1, c_in))                                   # (P, P*C_in)
    f_mat = jnp.pad(f_mat, ((0, k_dim - P), (0, 0)))                                  # (K, P*C_in)
    phase = jnp.tile(phase_g, P).reshape(1, P * c_in)
    w1bd = jnp.kron(eye_p, jnp.transpose(w1).astype(f32))                             # (P*C_in, P*C_out)
    w2bd = jnp.kron(eye_p, jnp.transpose(w2).astype(f32))                             # (P*C_out, P*C_out)
    b1t = jnp.tile(b1.astype(f32), P).reshape(1, P * c_out)
    b2t = jnp.tile(b2.astype(f32), P).reshape(1, P * c_out)

    return {"pack": P, "k_dim": k_dim, "c_in": c_in, "c_out": c_out,
            "F": f_mat, "phase": phase, "w1bd": w1bd, "b1": b1t, "w2bd": w2bd, "b2": b2t}


def noise_embedding(x, params, *, block_b=2048):
    """x: (...,) f32 noise levels (flattened like x.view(-1) in PyTorch).
    params: output of prepare_params. Returns (B, out_channels) f32."""
    P = params["pack"]
    k_dim = params["k_dim"]
    c_out = params["c_out"]
    f_mat, phase, w1bd, b1t, w2bd, b2t = (
        params[k] for k in ("F", "phase", "w1bd", "b1", "w2bd", "b2"))

    xf = x.reshape(-1).astype(jnp.float32)
    B = xf.shape[0]

    # Tiling in packed-row space (one row = P batch elements).
    rows_needed = -(-B // P)
    # Cap the tile so large-B calls get >= 2 grid steps: with ("parallel",)
    # semantics v7x can then shard the batch across both TensorCores.
    half_rows = _round_up(max(-(-rows_needed // 2), 1), 8)
    blk_rows = _round_up(max(block_b // P, 8), 8)
    tbp = min(blk_rows, half_rows)
    rows_pad = _round_up(rows_needed, tbp)
    B_pad = rows_pad * P

    if B_pad != B:
        xf = jnp.pad(xf, (0, B_pad - B))          # padded rows give finite garbage, sliced off
    x2d = xf.reshape(rows_pad, P)
    if k_dim != P:
        x2d = jnp.pad(x2d, ((0, 0), (0, k_dim - P)))

    # Weights / biases: full-array blocks, same block every grid step (VMEM-resident).
    resident = lambda a: pl.BlockSpec(a.shape, lambda i: (0,) * a.ndim)

    out = pl.pallas_call(
        _noise_embedding_kernel,
        out_shape=jax.ShapeDtypeStruct((rows_pad, P * c_out), jnp.float32),
        grid=(rows_pad // tbp,),
        in_specs=[
            pl.BlockSpec((tbp, k_dim), lambda i: (i, 0)),   # x: tiled over packed batch rows
            resident(f_mat),
            resident(phase),
            resident(w1bd),
            resident(b1t),
            resident(w2bd),
            resident(b2t),
        ],
        out_specs=pl.BlockSpec((tbp, P * c_out), lambda i: (i, 0)),
        compiler_params=pltpu.CompilerParams(
            dimension_semantics=("parallel",),              # batch axis is independent
        ),
    )(x2d, f_mat, phase, w1bd, b1t, w2bd, b2t)

    # Free row-major view back to the PyTorch layout, then drop padding.
    return out.reshape(B_pad, c_out)[:B]


def _reference(x, fourier_b, w1, b1, w2, b2):
    xf = x.reshape(-1)
    t = 2.0 * math.pi * jnp.outer(xf, fourier_b)
    feats = jnp.concatenate([jnp.sin(t), jnp.cos(t)], axis=-1)
    h = feats @ w1.T + b1
    h = jax.nn.silu(h)
    h = h @ w2.T + b2
    h = jax.nn.silu(h)
    return h


if __name__ == "__main__":
    in_channels = 32
    out_channels = 32
    scale = 16.0

    key = jax.random.PRNGKey(0)
    k_b, k_w1, k_b1, k_w2, k_b2, k_x = jax.random.split(key, 6)

    # Deterministic parameter init (shapes from NoiseEmbedding.__init__).
    fourier_b = jax.random.normal(k_b, (in_channels // 2,), jnp.float32) * scale
    bound1 = 1.0 / math.sqrt(in_channels)
    w1 = jax.random.uniform(k_w1, (out_channels, in_channels), jnp.float32, -bound1, bound1)
    b1 = jax.random.uniform(k_b1, (out_channels,), jnp.float32, -bound1, bound1)
    bound2 = 1.0 / math.sqrt(out_channels)
    w2 = jax.random.uniform(k_w2, (out_channels, out_channels), jnp.float32, -bound2, bound2)
    b2 = jax.random.uniform(k_b2, (out_channels,), jnp.float32, -bound2, bound2)

    params = prepare_params(fourier_b, w1, b1, w2, b2)

    # Case 1: typical SGMSE usage — one sigma(t) per batch element (B=8), single grid step.
    batch = 8
    x = jax.random.uniform(k_x, (batch,), jnp.float32, 0.05, 0.5)
    out = jax.block_until_ready(noise_embedding(x, params))
    ref = _reference(x, fourier_b, w1, b1, w2, b2)
    assert out.shape == (batch, out_channels)
    assert jnp.allclose(out, ref, atol=1e-5, rtol=1e-5), "mismatch vs reference (B=8)"

    # Case 2: batch not a multiple of pack/tile, multi-step grid (exercises padding,
    # pipelining over the batch, and the parallel grid axis).
    batch2 = 100
    x2 = jax.random.uniform(k_x, (batch2,), jnp.float32, 0.05, 0.5)
    out2 = jax.block_until_ready(noise_embedding(x2, params, block_b=64))
    ref2 = _reference(x2, fourier_b, w1, b1, w2, b2)
    assert out2.shape == (batch2, out_channels)
    assert jnp.allclose(out2, ref2, atol=1e-5, rtol=1e-5), "mismatch vs reference (B=100)"

    print("KERNEL_OK")
</pallas_src>

<mosaic_0001>
module attributes {stable_mosaic.version = 11 : i64} {
  func.func @_noise_embedding_kernel(%arg0: i32, %arg1: memref<8x8xf32, #tpu.memory_space<vmem>>, %arg2: memref<8x128xf32, #tpu.memory_space<vmem>>, %arg3: memref<1x128xf32, #tpu.memory_space<vmem>>, %arg4: memref<128x128xf32, #tpu.memory_space<vmem>>, %arg5: memref<1x128xf32, #tpu.memory_space<vmem>>, %arg6: memref<128x128xf32, #tpu.memory_space<vmem>>, %arg7: memref<1x128xf32, #tpu.memory_space<vmem>>, %arg8: memref<8x128xf32, #tpu.memory_space<vmem>>) attributes {dimension_semantics = [#tpu.dimension_semantics<parallel>], iteration_bounds = array<i64: 1>, scalar_prefetch = 0 : i64, scratch_operands = 0 : i64, tpu.core_type = #tpu.core_type<tc>, window_params = [{transform_indices = @transform_0, window_bounds = array<i64: 8, 8>}, {pipeline_mode = #tpu.pipeline_mode<synchronous>, transform_indices = @transform_1, window_bounds = array<i64: 8, 128>}, {pipeline_mode = #tpu.pipeline_mode<synchronous>, transform_indices = @transform_2, window_bounds = array<i64: 1, 128>}, {pipeline_mode = #tpu.pipeline_mode<synchronous>, transform_indices = @transform_3, window_bounds = array<i64: 128, 128>}, {pipeline_mode = #tpu.pipeline_mode<synchronous>, transform_indices = @transform_4, window_bounds = array<i64: 1, 128>}, {pipeline_mode = #tpu.pipeline_mode<synchronous>, transform_indices = @transform_5, window_bounds = array<i64: 128, 128>}, {pipeline_mode = #tpu.pipeline_mode<synchronous>, transform_indices = @transform_6, window_bounds = array<i64: 1, 128>}, {transform_indices = @transform_7, window_bounds = array<i64: 8, 128>}]} {
    %c0 = arith.constant 0 : index
    %c0_0 = arith.constant 0 : index
    %0 = vector.load %arg1[%c0, %c0_0] : memref<8x8xf32, #tpu.memory_space<vmem>>, vector<8x8xf32>
    %c0_1 = arith.constant 0 : index
    %c0_2 = arith.constant 0 : index
    %1 = vector.load %arg2[%c0_1, %c0_2] : memref<8x128xf32, #tpu.memory_space<vmem>>, vector<8x128xf32>
    %cst = arith.constant dense<0.000000e+00> : vector<8x128xf32>
    %2 = tpu.matmul %0, %1, %cst {dimension_numbers = #tpu.dot_dimension_numbers<[1], [0], [0], [1], [0, 0, 1, 1], [], []>} : vector<8x8xf32>, vector<8x128xf32>, vector<8x128xf32> -> vector<8x128xf32>
    %c0_3 = arith.constant 0 : index
    %c0_4 = arith.constant 0 : index
    %3 = vector.load %arg3[%c0_3, %c0_4] : memref<1x128xf32, #tpu.memory_space<vmem>>, vector<1x128xf32>
    %4 = vector.broadcast %3 : vector<1x128xf32> to vector<8x128xf32>
    %5 = arith.addf %2, %4 : vector<8x128xf32>
    %6 = math.sin %5 : vector<8x128xf32>
    %c0_5 = arith.constant 0 : index
    %c0_6 = arith.constant 0 : index
    %7 = vector.load %arg4[%c0_5, %c0_6] : memref<128x128xf32, #tpu.memory_space<vmem>>, vector<128x128xf32>
    %cst_7 = arith.constant dense<0.000000e+00> : vector<8x128xf32>
    %8 = tpu.matmul %6, %7, %cst_7 {dimension_numbers = #tpu.dot_dimension_numbers<[1], [0], [0], [1], [0, 0, 1, 1], [], []>} : vector<8x128xf32>, vector<128x128xf32>, vector<8x128xf32> -> vector<8x128xf32>
    %c0_8 = arith.constant 0 : index
    %c0_9 = arith.constant 0 : index
    %9 = vector.load %arg5[%c0_8, %c0_9] : memref<1x128xf32, #tpu.memory_space<vmem>>, vector<1x128xf32>
    %10 = vector.broadcast %9 : vector<1x128xf32> to vector<8x128xf32>
    %11 = arith.addf %8, %10 : vector<8x128xf32>
    %cst_10 = arith.constant 5.000000e-01 : f32
    %12 = vector.broadcast %cst_10 : f32 to vector<8x128xf32>
    %13 = arith.mulf %12, %11 : vector<8x128xf32>
    %cst_11 = arith.constant 5.000000e-01 : f32
    %14 = vector.broadcast %cst_11 : f32 to vector<8x128xf32>
    %15 = arith.mulf %14, %11 : vector<8x128xf32>
    %16 = math.tanh %15 : vector<8x128xf32>
    %cst_12 = arith.constant 1.000000e+00 : f32
    %17 = vector.broadcast %cst_12 : f32 to vector<8x128xf32>
    %18 = arith.addf %17, %16 : vector<8x128xf32>
    %19 = arith.mulf %13, %18 : vector<8x128xf32>
    %c0_13 = arith.constant 0 : index
    %c0_14 = arith.constant 0 : index
    %20 = vector.load %arg6[%c0_13, %c0_14] : memref<128x128xf32, #tpu.memory_space<vmem>>, vector<128x128xf32>
    %cst_15 = arith.constant dense<0.000000e+00> : vector<8x128xf32>
    %21 = tpu.matmul %19, %20, %cst_15 {dimension_numbers = #tpu.dot_dimension_numbers<[1], [0], [0], [1], [0, 0, 1, 1], [], []>} : vector<8x128xf32>, vector<128x128xf32>, vector<8x128xf32> -> vector<8x128xf32>
    %c0_16 = arith.constant 0 : index
    %c0_17 = arith.constant 0 : index
    %22 = vector.load %arg7[%c0_16, %c0_17] : memref<1x128xf32, #tpu.memory_space<vmem>>, vector<1x128xf32>
    %23 = vector.broadcast %22 : vector<1x128xf32> to vector<8x128xf32>
    %24 = arith.addf %21, %23 : vector<8x128xf32>
    %cst_18 = arith.constant 5.000000e-01 : f32
    %25 = vector.broadcast %cst_18 : f32 to vector<8x128xf32>
    %26 = arith.mulf %25, %24 : vector<8x128xf32>
    %cst_19 = arith.constant 5.000000e-01 : f32
    %27 = vector.broadcast %cst_19 : f32 to vector<8x128xf32>
    %28 = arith.mulf %27, %24 : vector<8x128xf32>
    %29 = math.tanh %28 : vector<8x128xf32>
    %cst_20 = arith.constant 1.000000e+00 : f32
    %30 = vector.broadcast %cst_20 : f32 to vector<8x128xf32>
    %31 = arith.addf %30, %29 : vector<8x128xf32>
    %32 = arith.mulf %26, %31 : vector<8x128xf32>
    %c0_21 = arith.constant 0 : index
    %c0_22 = arith.constant 0 : index
    %33 = vector.load %arg8[%c0_21, %c0_22] : memref<8x128xf32, #tpu.memory_space<vmem>>, vector<8x128xf32>
    tpu.vector_store %arg8[%c0_21, %c0_22], %32 {strides = array<i32>} : memref<8x128xf32, #tpu.memory_space<vmem>>, vector<8x128xf32>,
    return
  }
  func.func @transform_0(%arg0: i32) -> (i32, i32) {
    %c0_i32 = arith.constant 0 : i32
    %c0_i32_0 = arith.constant 0 : i32
    return %arg0, %c0_i32 : i32, i32
  }
  func.func @transform_1(%arg0: i32) -> (i32, i32) {
    %c0_i32 = arith.constant 0 : i32
    %c0_i32_0 = arith.constant 0 : i32
    %c0_i32_1 = arith.constant 0 : i32
    return %c0_i32, %c0_i32_0 : i32, i32
  }
  func.func @transform_2(%arg0: i32) -> (i32, i32) {
    %c0_i32 = arith.constant 0 : i32
    %c0_i32_0 = arith.constant 0 : i32
    %c0_i32_1 = arith.constant 0 : i32
    return %c0_i32, %c0_i32_0 : i32, i32
  }
  func.func @transform_3(%arg0: i32) -> (i32, i32) {
    %c0_i32 = arith.constant 0 : i32
    %c0_i32_0 = arith.constant 0 : i32
    %c0_i32_1 = arith.constant 0 : i32
    return %c0_i32, %c0_i32_0 : i32, i32
  }
  func.func @transform_4(%arg0: i32) -> (i32, i32) {
    %c0_i32 = arith.constant 0 : i32
    %c0_i32_0 = arith.constant 0 : i32
    %c0_i32_1 = arith.constant 0 : i32
    return %c0_i32, %c0_i32_0 : i32, i32
  }
  func.func @transform_5(%arg0: i32) -> (i32, i32) {
    %c0_i32 = arith.constant 0 : i32
    %c0_i32_0 = arith.constant 0 : i32
    %c0_i32_1 = arith.constant 0 : i32
    return %c0_i32, %c0_i32_0 : i32, i32
  }
  func.func @transform_6(%arg0: i32) -> (i32, i32) {
    %c0_i32 = arith.constant 0 : i32
    %c0_i32_0 = arith.constant 0 : i32
    %c0_i32_1 = arith.constant 0 : i32
    return %c0_i32, %c0_i32_0 : i32, i32
  }
  func.func @transform_7(%arg0: i32) -> (i32, i32) {
    %c0_i32 = arith.constant 0 : i32
    %c0_i32_0 = arith.constant 0 : i32
    return %arg0, %c0_i32 : i32, i32
  }
}

</mosaic_0001>

<bundles_post_ra>
// kernel: tpu_custom_call.1
= control target key start
LH: loop header
LB: loop body
LE: loop exit
PB: predicated region body
PF: predicated region fallthrough
CT: control target
= control target key end

     0   :  { %12 = vsyncpa [#allocation3], 0  ;;  %s867_s0 = inlined_call_operand.hbm [shape: f32[8,8], index: 0, kind: input, shape index: {}]   ;;  %s868_s1 = inlined_call_operand.hbm [shape: f32[8,128], index: 1, kind: input, shape index: {}]   ;;  %s869_s2 = inlined_call_operand.vmem [shape: f32[1,128], index: 2, kind: input, shape index: {}]   ;;  %s870_s3 = inlined_call_operand.hbm [shape: f32[128,128], index: 3, kind: input, shape index: {}]   ;;  %s871_s4 = inlined_call_operand.vmem [shape: f32[1,128], index: 4, kind: input, shape index: {}]   ;;  %s872_s5 = inlined_call_operand.hbm [shape: f32[128,128], index: 5, kind: input, shape index: {}]   ;;  %s873_s6 = inlined_call_operand.vmem [shape: f32[1,128], index: 6, kind: input, shape index: {}]   ;;  %s874_s7 = inlined_call_operand.hbm [shape: f32[8,128], index: 7, kind: output, shape index: {}]  }
   0x1   :  { %13 = vsyncpa [#allocation6], 0 }
   0x2   :  { %14 = vsyncpa [#allocation9], 0 }
   0x3   :  { %15 = vsyncpa [#allocation4], 0  ;;  %s731_s24 = smov [#allocation5]   ;;  %s732_s26 = smov [#allocation2]  }
   0x4   :  { %s32_s25 = sshll.u32 %s731_s24, 4  ;;  %s22_s27 = sshll.u32 %s732_s26, 4  ;;  %s33_s25 = int_to_ptr.vmem [resolvable:$true] %s32_s25  ;;  %s23_s27 = int_to_ptr.vmem [resolvable:$true] %s22_s27 }
   0x5   :  { %s631_s28 = scalar_lea.vmem %s33_s25, 128  ;;  %p636_p1 = scmp.lt.s32.totalorder %s33_s25, %s33_s25 }
   0x6   :  { %p632_p0 = scmp.ne.s32.totalorder %s33_s25, %s631_s28  ;;  %p637_p2 = scmp.lt.s32.totalorder %s631_s28, %s631_s28 }
   0x8   :  { %p638_p3 = por %p637_p2, %p636_p1 }
   0xa   :  { %p639_p4 = pnand %p638_p3, %p632_p0 }
   0xc   :  { %642 = shalt.err (!%p639_p4)
}
   0xd   :  { %35 = dma.hbm_to_vmem [thread:$0]  %s868_s1, 128, %s33_s25, [#allocation6]  }
   0xe   :  { %s651_s8 = scalar_lea.vmem %s23_s27, 128  ;;  %p656_p6 = scmp.lt.s32.totalorder %s23_s27, %s23_s27 }
   0xf   :  { %p652_p5 = scmp.ne.s32.totalorder %s23_s27, %s651_s8  ;;  %p657_p7 = scmp.lt.s32.totalorder %s651_s8, %s651_s8 }
  0x11   :  { %p658_p8 = por %p657_p7, %p656_p6 }
  0x13   :  { %p659_p9 = pnand %p658_p8, %p652_p5 }
  0x15   :  { %662 = shalt.err (!%p659_p9)
}
  0x16   :  { %25 = dma.hbm_to_vmem [thread:$0]  %s867_s0, 128, %s23_s27, [#allocation3]  }
  0x17   :  { %s733_s11 = smov [#allocation7]  }
  0x18   :  { %s43_s12 = sshll.u32 %s733_s11, 4  ;;  %s44_s12 = int_to_ptr.vmem [resolvable:$true] %s43_s12 }
  0x19   :  { %s671_s13 = scalar_lea.vmem %s44_s12, 2048  ;;  %p676_p11 = scmp.lt.s32.totalorder %s44_s12, %s44_s12 }
  0x1a   :  { %p672_p10 = scmp.ne.s32.totalorder %s44_s12, %s671_s13  ;;  %p677_p12 = scmp.lt.s32.totalorder %s671_s13, %s671_s13 }
  0x1c   :  { %p678_p13 = por %p677_p12, %p676_p11 }
  0x1e   :  { %p679_p0 = pnand %p678_p13, %p672_p10 }
  0x20   :  { %682 = shalt.err (!%p679_p0)
}
  0x21   :  { %s734_s1 = smov 128   ;;  %s735_s14 = smov 8  }
  0x22   :  { %49 = dma.hbm_to_vmem [thread:$0]  %s870_s3, 2048, %s44_s12, [#allocation6], %s734_s1, %s734_s1, %s735_s14  }
  0x23   :  { %s736_s17 = smov [#allocation8]  }
  0x24   :  { %s57_s18 = sshll.u32 %s736_s17, 4  ;;  %s58_s18 = int_to_ptr.vmem [resolvable:$true] %s57_s18 }
  0x25   :  { %s691_s0 = scalar_lea.vmem %s58_s18, 2048  ;;  %p696_p2 = scmp.lt.s32.totalorder %s58_s18, %s58_s18 }
  0x26   :  { %p692_p1 = scmp.ne.s32.totalorder %s58_s18, %s691_s0  ;;  %p697_p3 = scmp.lt.s32.totalorder %s691_s0, %s691_s0 }
  0x28   :  { %p698_p4 = por %p697_p3, %p696_p2 }
  0x2a   :  { %p699_p5 = pnand %p698_p4, %p692_p1 }
  0x2c   :  { %702 = shalt.err (!%p699_p5)
}
  0x2d   :  { %63 = dma.hbm_to_vmem [thread:$0]  %s872_s5, 2048, %s58_s18, [#allocation9], %s734_s1, %s734_s1, %s735_s14  }
  0x2e   :  { %723 = dma.done.wait [#allocation3], 128  }
  0x2f   :  { %724 = vsyncadd [#allocation3], 4294967168 }
  0x30   :  { %725 = dma.done.wait [#allocation6], 2176  }
  0x31   :  { %726 = vsyncadd [#allocation6], 4294965120 }
  0x32   :  { %727 = dma.done.wait [#allocation9], 2048  }
  0x33   :  { %728 = vsyncadd [#allocation9], 4294965248  ;;  %v737_v0 = vmov 0.0   ;;  %vm738_vm0 = vmmov 0   ;;  %vm87_vm1 = vcmask 64512   ;;  %v79_v1 = vld [vmem:[#allocation5] sm:$0xff] }
  0x34   :  { %521 = vmatprep.subr.mxu0 %v737_v0  ;;  %523 = vmatprep.mubr.msk.f32.mxu0 %vm738_vm0, %v737_v0  ;;  %v78_v2 = vld [vmem:[#allocation2] sm:$0xff]  ;;  %v280_v3 = vld [vmem:[#allocation7 + $0x78] sm:$0xff]  ;;  %v278_v5 = vld [vmem:[#allocation7 + $0x68] sm:$0xff]  ;;  %v739_v37 = vmov 683565275  }
  0x35   :  { %526 = vmatprep.subr.mxu1 %v737_v0  ;;  %558 = vmatprep.mubr.msk.f32.mxu1 %vm738_vm0, %v737_v0  ;;  %v279_v4 = vld [vmem:[#allocation7 + $0x70] sm:$0xff]  ;;  %v277_v6 = vld [vmem:[#allocation7 + $0x60] sm:$0xff]  ;;  %v276_v7 = vld [vmem:[#allocation7 + $0x58] sm:$0xff]  ;;  %v740_v39 = vmov 2475754826  }
  0x36   :  { %522 = vmatpush3.msra.mxu0 %v79_v1  ;;  %527 = vmatpush3.msra.mxu1 %v280_v3  ;;  %v275_v8 = vld [vmem:[#allocation7 + $0x50] sm:$0xff]  ;;  %v274_v9 = vld [vmem:[#allocation7 + $0x48] sm:$0xff]  ;;  %v273_v10 = vld [vmem:[#allocation7 + $0x40] sm:$0xff]  ;;  %v741_v42 = vmov 2131351028  }
  0x37   :  { %524 = vmatmul.mubr.msk.f32.vlgmr.msra.gmra.mxu0 %vm87_vm1, %v78_v2  ;;  %561 = vmatprep.subr.mxu0 %v737_v0  ;;  %v272_v11 = vld [vmem:[#allocation7 + $0x38] sm:$0xff]  ;;  %v271_v12 = vld [vmem:[#allocation7 + $0x30] sm:$0xff]  ;;  %v270_v13 = vld [vmem:[#allocation7 + $0x28] sm:$0xff]  ;;  %v742_v45 = vmov 2102212464  }
  0x38   :  { %593 = vmatprep.mubr.msk.f32.mxu0 %vm738_vm0, %v737_v0  ;;  %528 = vmatprep.subr.mxu1 %v737_v0  ;;  %v269_v14 = vld [vmem:[#allocation7 + $0x20] sm:$0xff]  ;;  %v268_v15 = vld [vmem:[#allocation7 + $0x18] sm:$0xff]  ;;  %v267_v16 = vld [vmem:[#allocation7 + $0x10] sm:$0xff]  ;;  %v743_v48 = vmov 920167782  }
  0x39   :  { %529 = vmatpush3.msra.mxu1 %v279_v4  ;;  %v266_v17 = vld [vmem:[#allocation7 + $0x8] sm:$0xff]  ;;  %v265_v18 = vld [vmem:[#allocation7] sm:$0xff]  ;;  %v377_v19 = vld [vmem:[#allocation8 + $0x78] sm:$0xff]  ;;  %v744_v51 = vmov 1326507024  }
  0x3a   :  { %530 = vmatprep.subr.mxu1 %v737_v0  ;;  %v376_v20 = vld [vmem:[#allocation8 + $0x70] sm:$0xff]  ;;  %562 = vmatpush3.msra.mxu0 %v377_v19  ;;  %v375_v21 = vld [vmem:[#allocation8 + $0x68] sm:$0xff]  ;;  %v374_v22 = vld [vmem:[#allocation8 + $0x60] sm:$0xff] }
  0x3b   :  { %531 = vmatpush3.msra.mxu1 %v278_v5  ;;  %563 = vmatprep.subr.mxu0 %v737_v0  ;;  %v477_v23 = vld [vmem:[%s869_s2] ss:$0 sm:$0xff] }
  0x3c   :  { %532 = vmatprep.subr.mxu1 %v737_v0  ;;  %564 = vmatpush3.msra.mxu0 %v376_v20 }
  0x3d   :  { %533 = vmatpush3.msra.mxu1 %v277_v6  ;;  %565 = vmatprep.subr.mxu0 %v737_v0 }
  0x3e   :  { %534 = vmatprep.subr.mxu1 %v737_v0  ;;  %566 = vmatpush3.msra.mxu0 %v375_v21 }
  0x3f   :  { %535 = vmatpush3.msra.mxu1 %v276_v7  ;;  %567 = vmatprep.subr.mxu0 %v737_v0 }
  0x40   :  { %536 = vmatprep.subr.mxu1 %v737_v0  ;;  %568 = vmatpush3.msra.mxu0 %v374_v22 }
  0x41   :  { %537 = vmatpush3.msra.mxu1 %v275_v8  ;;  %569 = vmatprep.subr.mxu0 %v737_v0 }
  0x42   :  { %538 = vmatprep.subr.mxu1 %v737_v0 }
  0x43   :  { %539 = vmatpush3.msra.mxu1 %v274_v9 }
  0x44   :  { %540 = vmatprep.subr.mxu1 %v737_v0 }
  0x45   :  { %541 = vmatpush3.msra.mxu1 %v273_v10 }
  0x46   :  { %542 = vmatprep.subr.mxu1 %v737_v0 }
  0x47   :  { %543 = vmatpush3.msra.mxu1 %v272_v11 }
  0x48   :  { %544 = vmatprep.subr.mxu1 %v737_v0 }
  0x49   :  { %545 = vmatpush3.msra.mxu1 %v271_v12 }
  0x4a   :  { %546 = vmatprep.subr.mxu1 %v737_v0 }
  0x4b   :  { %547 = vmatpush3.msra.mxu1 %v270_v13 }
  0x4c   :  { %548 = vmatprep.subr.mxu1 %v737_v0 }
  0x4d   :  { %549 = vmatpush3.msra.mxu1 %v269_v14 }
  0x4e   :  { %550 = vmatprep.subr.mxu1 %v737_v0 }
  0x4f   :  { %551 = vmatpush3.msra.mxu1 %v268_v15 }
  0x50   :  { %552 = vmatprep.subr.mxu1 %v737_v0 }
  0x51   :  { %553 = vmatpush3.msra.mxu1 %v267_v16 }
  0x52   :  { %554 = vmatprep.subr.mxu1 %v737_v0 }
  0x53   :  { %555 = vmatpush3.msra.mxu1 %v266_v17 }
  0x54   :  { %556 = vmatprep.subr.mxu1 %v737_v0 }
  0x55   :  { %557 = vmatpush3.msra.mxu1 %v265_v18 }
  0xf7   :  { %v157_v24 = vpop.f32.mrf.mxu0 }
  0xf8   :  { %v826_v25 = vadd.f32 %v477_v23, %v157_v24 }
  0xf9   :  { %v525_v26 = vpop.f32.mrf.mxu0 }
  0xfa   :  { %v164_v27 = vand.u32 2139095040, %v826_v25  ;;  %v161_v31 = vand.u32 2147483647, %v826_v25  ;;  %vm163_vm9 = vcmp.lt.s32.totalorder %v826_v25, 0  ;;  %vm253_vm14 = vweird.f32 %v826_v25 }
  0xfc   :  { %v165_v28 = vshrl.u32 %v164_v27, 23  ;;  %v168_v34 = vand.u32 8388607, %v161_v31  ;;  %vm162_vm10 = vcmp.le.f32.partialorder %v161_v31, 0.7853982 }
  0xfe   :  { %v479_v29 = vadd.s32 4294967169, %v165_v28  ;;  %v169_v53 = vor.u32 8388608, %v168_v34 }
 0x100   :  { %v171_v30 = vadd.s32 1, %v479_v29  ;;  %v209_v4 = vshll.u32 %v169_v53, 8 }
 0x102   :  { %vm172_vm2 = vcmp.gt.s32.totalorder %v171_v30, 0 }
 0x103   :  { %v173_v32 = vsel %vm172_vm2, %v171_v30, 0 }
 0x104   :  { %v175_v33 = vand.u32 31, %v173_v32  ;;  %v174_v36 = vshrl.u32 %v173_v32, 5 }
 0x106   :  { %v176_v35 = vsub.s32 32, %v175_v33  ;;  %v178_v38 = vshll.u32 %v739_v37, %v175_v33  ;;  %v181_v40 = vshll.u32 %v740_v39, %v175_v33  ;;  %v184_v44 = vshll.u32 %v741_v42, %v175_v33 }
 0x107   :  { %v187_v47 = vshll.u32 %v742_v45, %v175_v33  ;;  %v190_v50 = vshll.u32 %v743_v48, %v175_v33  ;;  %vm193_vm3 = vcmp.lt.s32.totalorder %v174_v36, 1  ;;  %vm196_vm4 = vcmp.lt.s32.totalorder %v174_v36, 4 }
 0x108   :  { %v179_v41 = vshrl.u32 %v740_v39, %v176_v35  ;;  %v182_v43 = vshrl.u32 %v741_v42, %v176_v35  ;;  %v185_v46 = vshrl.u32 %v742_v45, %v176_v35  ;;  %v188_v49 = vshrl.u32 %v743_v48, %v176_v35 }
 0x109   :  { %v191_v52 = vshrl.u32 %v744_v51, %v176_v35  ;;  %v177_v62 = vshrl.u32 %v739_v37, %v176_v35  ;;  %vm195_vm5 = vcmp.lt.s32.totalorder %v174_v36, 3  ;;  %vm194_vm6 = vcmp.lt.s32.totalorder %v174_v36, 2 }
 0x10a   :  { %v180_v54 = vor.u32 %v179_v41, %v178_v38  ;;  %v183_v55 = vor.u32 %v182_v43, %v181_v40  ;;  %v186_v56 = vor.u32 %v185_v46, %v184_v44  ;;  %v189_v57 = vor.u32 %v188_v49, %v187_v47 }
 0x10b   :  { %v192_v58 = vor.u32 %v191_v52, %v190_v50 }
 0x10c   :  { %v198_v59 = vsel %vm196_vm4, %v186_v56, 2102212464  ;;  %v201_v60 = vsel %vm193_vm3, %v180_v54, %v183_v55  ;;  %v205_v61 = vsel %vm193_vm3, %v183_v55, %v186_v56  ;;  %v202_v63 = vsel %vm196_vm4, %v189_v57, 920167782 }
 0x10d   :  { %v206_v1 = vsel %vm196_vm4, %v192_v58, 1326507024  ;;  %v203_v2 = vsel %vm195_vm5, %v186_v56, %v202_v63  ;;  %v197_v5 = vsel %vm193_vm3, %v177_v62, %v180_v54  ;;  %v199_v6 = vsel %vm195_vm5, %v183_v55, %v198_v59  ;;  %v373_v56 = vld [vmem:[#allocation8 + $0x58] sm:$0xff]  ;;  %v371_v58 = vld [vmem:[#allocation8 + $0x48] sm:$0xff]  ;;  %v370_v59 = vld [vmem:[#allocation8 + $0x40] sm:$0xff] }
 0x10e   :  { %v207_v3 = vsel %vm195_vm5, %v189_v57, %v206_v1  ;;  %v204_v7 = vsel %vm194_vm6, %v201_v60, %v203_v2  ;;  %v200_v13 = vsel %vm194_vm6, %v197_v5, %v199_v6  ;;  %570 = vmatpush3.msra.mxu0 %v373_v56  ;;  %v372_v57 = vld [vmem:[#allocation8 + $0x50] sm:$0xff]  ;;  %v366_v62 = vld [vmem:[#allocation8 + $0x20] sm:$0xff]  ;;  %v365_v63 = vld [vmem:[#allocation8 + $0x18] sm:$0xff] }
 0x10f   :  { %v208_v8 = vsel %vm194_vm6, %v205_v61, %v207_v3  ;;  %v835_v11 = vmul.u32.u64.low %v209_v4, %v204_v7  ;;  %v836_v12 = vmul.u32.u64.high %v209_v4, %v204_v7, %v835_v11  ;;  %v216_v15 = vmul.u32 %v209_v4, %v200_v13  ;;  %571 = vmatprep.subr.mxu0 %v737_v0  ;;  %v368_v60 = vld [vmem:[#allocation8 + $0x30] sm:$0xff]  ;;  %v367_v61 = vld [vmem:[#allocation8 + $0x28] sm:$0xff]  ;;  %v362_v3 = vld [vmem:[#allocation8] sm:$0xff] }
 0x110   :  { %v832_v9 = vmul.u32.u64.low %v209_v4, %v208_v8  ;;  %v833_v10 = vmul.u32.u64.high %v209_v4, %v208_v8, %v832_v9  ;;  %572 = vmatpush3.msra.mxu0 %v372_v57  ;;  %v364_v1 = vld [vmem:[#allocation8 + $0x10] sm:$0xff]  ;;  %v363_v2 = vld [vmem:[#allocation8 + $0x8] sm:$0xff] }
 0x111   :  { %v219_v14 = vadd.s32 1, %v836_v12  ;;  %573 = vmatprep.subr.mxu0 %v737_v0  ;;  %v483_v4 = vld [vmem:[%s871_s4] ss:$0 sm:$0xff]  ;;  %s745_s4 = smov [#allocation10]  }
 0x112   :  { %vm218_vm7 = vc.u32 %v833_v10, %v835_v11  ;;  %v217_v28 = vadd.s32 %v835_v11, %v833_v10  ;;  %574 = vmatpush3.msra.mxu0 %v371_v58  ;;  %s466_s24 = sshll.u32 %s745_s4, 4  ;;  %s467_s24 = int_to_ptr.vmem [resolvable:$true] %s466_s24 }
 0x113   :  { %v220_v16 = vsel %vm218_vm7, %v219_v14, %v836_v12  ;;  %575 = vmatprep.subr.mxu0 %v737_v0  ;;  %v484_v12 = vld [vmem:[%s873_s6] ss:$0 sm:$0xff]  ;;  %s703_s25 = scalar_lea.vmem %s467_s24, 128  ;;  %p708_p7 = scmp.lt.s32.totalorder %s467_s24, %s467_s24 }
 0x114   :  { %v221_v17 = vadd.s32 %v220_v16, %v216_v15  ;;  %576 = vmatpush3.msra.mxu0 %v370_v59  ;;  %p704_p6 = scmp.ne.s32.totalorder %s467_s24, %s703_s25  ;;  %p709_p8 = scmp.lt.s32.totalorder %s703_s25, %s703_s25 }
 0x115   :  { %577 = vmatprep.subr.mxu0 %v737_v0 }
 0x116   :  { %v222_v18 = vadd.s32 536870912, %v221_v17  ;;  %p710_p9 = por %p709_p8, %p708_p7 }
 0x118   :  { %v223_v19 = vshrl.u32 %v222_v18, 30  ;;  %p711_p10 = pnand %p710_p9, %p704_p6 }
 0x11a   :  { %v224_v20 = vshll.u32 %v223_v19, 30  ;;  %v247_v42 = vsub.s32 4, %v223_v19 }
 0x11c   :  { %v225_v21 = vsub.s32 %v221_v17, %v224_v20  ;;  %v248_v45 = vsel %vm163_vm9, %v247_v42, %v223_v19 }
 0x11d   :  { %v250_v46 = vsel %vm162_vm10, 0, %v248_v45 }
 0x11e   :  { %v227_v22 = vsub.s32 0, %v225_v21  ;;  %v254_v47 = vadd.s32 3, %v250_v46 }
 0x120   :  { %v480_v23 = vmin.u32 %v227_v22, %v225_v21  ;;  %v255_v48 = vand.u32 3, %v254_v47 }
 0x122   :  { %v229_v24 = vclz %v480_v23  ;;  %vm260_vm11 = vcmp.eq.s32.totalorder %v255_v48, 2  ;;  %vm257_vm12 = vcmp.eq.s32.totalorder %v255_v48, 0  ;;  %vm256_vm13 = vcmp.lt.s32.totalorder %v255_v48, 2 }
 0x124   :  { %v481_v26 = vadd.s32 4294967294, %v229_v24 }
 0x126   :  { %vm482_vm8 = vcmp.lt.s32.totalorder %v481_v26, 0 }
 0x127   :  { %v232_v27 = vsel %vm482_vm8, 0, %v481_v26 }
 0x128   :  { %v233_v29 = vsub.s32 32, %v232_v27  ;;  %v237_v30 = vsub.s32 4294967266, %v232_v27  ;;  %v234_v32 = vshll.u32 %v225_v21, %v232_v27 }
 0x12a   :  { %v235_v33 = vshrl.u32 %v217_v28, %v233_v29  ;;  %v238_v34 = vadd.s32 127, %v237_v30 }
 0x12c   :  { %v236_v35 = vor.u32 %v235_v33, %v234_v32  ;;  %v239_v36 = vshll.u32 %v238_v34, 23 }
 0x12e   :  { %v240_v37 = vor.u32 4788187, %v239_v36  ;;  %v243_v39 = vcvt.s32.f32 %v236_v35 }
 0x130   :  { %v241_v38 = vand.u32 2147483647, %v240_v37 }
 0x132   :  { %v244_v40 = vmul.f32 %v243_v39, %v241_v38 }
 0x134   :  { %v245_v41 = vxor.u32 2147483648, %v244_v40 }
 0x136   :  { %v246_v43 = vsel %vm163_vm9, %v245_v41, %v244_v40 }
 0x137   :  { %v249_v44 = vsel %vm162_vm10, %v826_v25, %v246_v43  ;;  %v369_v25 = vld [vmem:[#allocation8 + $0x38] sm:$0xff] }
 0x138   :  { %615 = vcosq.f32 %v249_v44  ;;  %578 = vmatpush3.msra.mxu0 %v369_v25 }
 0x139   :  { %617 = vsinq.f32 %v249_v44  ;;  %579 = vmatprep.subr.mxu0 %v737_v0 }
 0x13a   :  { %580 = vmatpush3.msra.mxu0 %v368_v60 }
 0x13b   :  { %581 = vmatprep.subr.mxu0 %v737_v0 }
 0x13c   :  { %582 = vmatpush3.msra.mxu0 %v367_v61 }
 0x13d   :  { %583 = vmatprep.subr.mxu0 %v737_v0 }
 0x13e   :  { %584 = vmatpush3.msra.mxu0 %v366_v62 }
 0x13f   :  { %585 = vmatprep.subr.mxu0 %v737_v0 }
 0x140   :  { %586 = vmatpush3.msra.mxu0 %v365_v63 }
 0x141   :  { %587 = vmatprep.subr.mxu0 %v737_v0 }
 0x142   :  { %588 = vmatpush3.msra.mxu0 %v364_v1 }
 0x143   :  { %589 = vmatprep.subr.mxu0 %v737_v0 }
 0x144   :  { %590 = vmatpush3.msra.mxu0 %v363_v2 }
 0x145   :  { %v616_v49 = vpop.eup %615  ;;  %591 = vmatprep.subr.mxu0 %v737_v0 }
 0x146   :  { %v618_v50 = vpop.eup %617  ;;  %v261_v51 = vxor.u32 2147483648, %v616_v49  ;;  %592 = vmatpush3.msra.mxu0 %v362_v3 }
 0x147   :  { %v258_v52 = vxor.u32 2147483648, %v618_v50 }
 0x148   :  { %v262_v53 = vsel %vm260_vm11, %v261_v51, %v618_v50 }
 0x149   :  { %v259_v54 = vsel %vm257_vm12, %v616_v49, %v258_v52 }
 0x14a   :  { %v263_v31 = vsel %vm256_vm13, %v259_v54, %v262_v53 }
 0x14b   :  { %v264_v55 = vsel %vm253_vm14, nan, %v263_v31 }
 0x14c   :  { %559 = vmatmul.mubr.f32.vlgmr.msra.gmra.mxu1 %v264_v55 }
 0x20c   :  { %v354_v5 = vpop.f32.mrf.mxu1 }
 0x20d   :  { %v355_v6 = vadd.f32 %v483_v4, %v354_v5 }
 0x20e   :  { %v560_v7 = vpop.f32.mrf.mxu1 }
 0x20f   :  { %v358_v8 = vmul.f32 0.5, %v355_v6 }
 0x211   :  { %619 = vtanh.f32 %v358_v8 }
 0x21e   :  { %v620_v9 = vpop.eup %619 }
 0x21f   :  { %v360_v10 = vadd.f32 1.0, %v620_v9 }
 0x221   :  { %v361_v11 = vmul.f32 %v360_v10, %v358_v8 }
 0x223   :  { %594 = vmatmul.mubr.f32.vlgmr.msra.gmra.mxu0 %v361_v11 }
 0x2e3   :  { %v451_v13 = vpop.f32.mrf.mxu0 }
 0x2e4   :  { %v452_v0 = vadd.f32 %v484_v12, %v451_v13 }
 0x2e5   :  { %v595_v14 = vpop.f32.mrf.mxu0 }
 0x2e6   :  { %v455_v15 = vmul.f32 0.5, %v452_v0 }
 0x2e8   :  { %621 = vtanh.f32 %v455_v15 }
 0x2f5   :  { %v622_v16 = vpop.eup %621 }
 0x2f6   :  { %v457_v17 = vadd.f32 1.0, %v622_v16 }
 0x2f8   :  { %v458_v18 = vmul.f32 %v457_v17, %v455_v15 }
 0x2fa   :  { %459 = vst [vmem:[#allocation10] sm:$0xff] %v458_v18 }
 0x2fb   :  { %714 = shalt.err (!%p711_p10)
}
 0x2fc   :  { %469 = dma.vmem_to_hbm [thread:$0]  %s467_s24, 128, %s874_s7, [#allocation4]  }
 0x2fd   :  { %729 = dma.done.wait [#allocation4], 128  }
 0x2fe   :  { %730 = vsyncadd [#allocation4], 4294967168 }
 0x2ff   :  { %473 = vsyncpa [#allocation3], 1 }
 0x300   :  { %474 = vsyncpa [#allocation6], 1 }
 0x301   :  { %475 = vsyncpa [#allocation9], 1 }
 0x302   :  { %476 = vsyncpa [#allocation4], 1 }

</bundles_post_ra>
